<compile_context>
chip_gen: v6e
topology: v6e:2x2x1
jax: 0.10.0
libtpu: 0.0.40
codegen_flags: <defaults>
</compile_context>

<pallas_src>
import functools

import jax
import jax.numpy as jnp
from jax import lax
from jax.experimental import pallas as pl
from jax.experimental.pallas import tpu as pltpu


def _gemm_bias_relu_kernel(w_ref, b_ref, p_ref, o_ref, *, mxu_dtype):
    # w_ref: (Cout, K)      resident weights, K = Cin*KH*KW
    # b_ref: (Cout, 1)      bias column (broadcast along lanes)
    # p_ref: (1, K, L)      im2col patches for this grid step, L % 128 == 0
    # o_ref: (1, Cout, L)   lane-dense output block (unmasked full-lane vst)
    lhs = w_ref[...]
    rhs = p_ref[0]
    if mxu_dtype is not None:             # optional bf16 MXU path (off by default)
        lhs = lhs.astype(mxu_dtype)
        rhs = rhs.astype(mxu_dtype)

    # Single MXU matmul, f32 accumulate: (Cout, K) @ (K, L) -> (Cout, L).
    acc = jnp.dot(lhs, rhs, preferred_element_type=jnp.float32)

    # Lane-dense epilogue: bias broadcast along lanes + ReLU, one full store.
    out = jnp.maximum(acc + b_ref[...].astype(jnp.float32), 0.0)
    o_ref[0] = out.astype(o_ref.dtype)


def _pick_batch_block(n, max_b=8):
    """Images folded per grid step; keep >= 2 grid steps so both v7x TCs work."""
    if n <= 2:
        return 1
    for b in range(min(max_b, n // 2), 0, -1):
        if n % b == 0:
            return b
    return 1


def conv_block_forward(x_nchw, weight_oihw, bias, *, stride, padding,
                       mxu_dtype=None):
    """ConvBlock.forward: Conv2d(stride, padding) + ReLU.  Input/output NCHW."""
    N, Cin, H, W = x_nchw.shape
    Cout, _, KH, KW = weight_oihw.shape
    Ho = (H + 2 * padding - KH) // stride + 1
    Wo = (W + 2 * padding - KW) // stride + 1
    K = Cin * KH * KW

    # ---- Wrapper-side im2col (cheap at small H/W; see TODO for large). ----
    xp = jnp.pad(x_nchw, ((0, 0), (0, 0),
                          (padding, padding), (padding, padding)))
    taps = []
    for kh in range(KH):
        for kw in range(KW):
            taps.append(lax.slice(
                xp, (0, 0, kh, kw),
                (N, Cin,
                 kh + (Ho - 1) * stride + 1,
                 kw + (Wo - 1) * stride + 1),
                (1, 1, stride, stride)))                  # (N, Cin, Ho, Wo)
    # K-axis ordering: ci major, (kh, kw) minor — matches OIHW weight reshape.
    patches = jnp.stack(taps, axis=2)                     # (N, Cin, KH*KW, Ho, Wo)
    patches = patches.reshape(N, K, Ho * Wo)

    # Pad the flat pixel axis to a multiple of 128 -> unmasked full-lane vst.
    P = ((Ho * Wo + 127) // 128) * 128
    if P != Ho * Wo:
        patches = jnp.pad(patches, ((0, 0), (0, 0), (0, P - Ho * Wo)))

    # Fold B images per grid step into the matmul lane axis: (G, K, B*P).
    B = _pick_batch_block(N)
    G = N // B
    L = B * P
    patches = patches.reshape(G, B, K, P).transpose(0, 2, 1, 3).reshape(G, K, L)

    # Weight OIHW -> (Cout, Cin*KH*KW): ci major, (kh, kw) minor.  Tiny, once.
    w_mat = weight_oihw.reshape(Cout, K)
    b_col = bias.reshape(Cout, 1)

    kernel = functools.partial(_gemm_bias_relu_kernel, mxu_dtype=mxu_dtype)

    out_blocked = pl.pallas_call(
        kernel,
        out_shape=jax.ShapeDtypeStruct((G, Cout, L), x_nchw.dtype),
        grid_spec=pltpu.PrefetchScalarGridSpec(
            num_scalar_prefetch=0,
            grid=(G,),                                    # >= 2 steps when N >= 2
            in_specs=[
                pl.BlockSpec((Cout, K), lambda g: (0, 0)),
                pl.BlockSpec((Cout, 1), lambda g: (0, 0)),
                pl.BlockSpec((1, K, L), lambda g: (g, 0, 0)),
            ],
            out_specs=pl.BlockSpec((1, Cout, L), lambda g: (g, 0, 0)),
        ),
        compiler_params=pltpu.CompilerParams(
            dimension_semantics=("parallel",),            # shard grid across TCs
            vmem_limit_bytes=32 * 1024 * 1024,            # safe on v5e/v6e/v7x
        ),
    )(w_mat, b_col, patches)

    # Un-fold: (G, Cout, B*P) -> (N, Cout, Ho, Wo).  Free when B == 1.
    out = out_blocked.reshape(G, Cout, B, P).transpose(0, 2, 1, 3)
    out = out.reshape(N, Cout, P)[:, :, :Ho * Wo].reshape(N, Cout, Ho, Wo)
    return out


if __name__ == "__main__":
    # ConvBlock(input_size=4, output_size=8, kernel=3, stride=1, padding=1)
    input_size, output_size, kernel_size, stride, padding = 4, 8, 3, 1, 1
    N, H, W = 2, 16, 16

    key = jax.random.PRNGKey(0)
    kx, kw_, kb = jax.random.split(key, 3)
    x = jax.random.normal(kx, (N, input_size, H, W), dtype=jnp.float32)
    weight = 0.1 * jax.random.normal(
        kw_, (output_size, input_size, kernel_size, kernel_size),
        dtype=jnp.float32)
    bias = 0.1 * jax.random.normal(kb, (output_size,), dtype=jnp.float32)

    out = conv_block_forward(x, weight, bias, stride=stride, padding=padding)
    out = jax.block_until_ready(out)

    # Reference check against XLA conv (same semantics as torch Conv2d + ReLU).
    ref = lax.conv_general_dilated(
        x, weight, window_strides=(stride, stride),
        padding=((padding, padding), (padding, padding)),
        dimension_numbers=("NCHW", "OIHW", "NCHW"))
    ref = jnp.maximum(ref + bias.reshape(1, -1, 1, 1), 0.0)
    assert out.shape == (N, output_size, H, W)
    assert jnp.allclose(out, ref, atol=1e-4, rtol=1e-4)

    print("KERNEL_OK")
</pallas_src>

<mosaic_0001>
module attributes {stable_mosaic.version = 11 : i64} {
  func.func @_gemm_bias_relu_kernel(%arg0: i32, %arg1: memref<8x36xf32, #tpu.memory_space<vmem>>, %arg2: memref<8x1xf32, #tpu.memory_space<vmem>>, %arg3: memref<1x36x256xf32, #tpu.memory_space<vmem>>, %arg4: memref<1x8x256xf32, #tpu.memory_space<vmem>>) attributes {dimension_semantics = [#tpu.dimension_semantics<parallel>], iteration_bounds = array<i64: 2>, scalar_prefetch = 0 : i64, scratch_operands = 0 : i64, tpu.core_type = #tpu.core_type<tc>, window_params = [{pipeline_mode = #tpu.pipeline_mode<synchronous>, transform_indices = @transform_0, window_bounds = array<i64: 8, 36>}, {pipeline_mode = #tpu.pipeline_mode<synchronous>, transform_indices = @transform_1, window_bounds = array<i64: 8, 1>}, {transform_indices = @transform_2, window_bounds = array<i64: 1, 36, 256>}, {transform_indices = @transform_3, window_bounds = array<i64: 1, 8, 256>}]} {
    %c0 = arith.constant 0 : index
    %c0_0 = arith.constant 0 : index
    %0 = vector.load %arg1[%c0, %c0_0] : memref<8x36xf32, #tpu.memory_space<vmem>>, vector<8x36xf32>
    %c0_1 = arith.constant 0 : index
    %c0_2 = arith.constant 0 : index
    %c0_3 = arith.constant 0 : index
    %1 = vector.load %arg3[%c0_1, %c0_2, %c0_3] : memref<1x36x256xf32, #tpu.memory_space<vmem>>, vector<1x36x256xf32>
    %2 = vector.shape_cast %1 : vector<1x36x256xf32> to vector<36x256xf32>
    %cst = arith.constant dense<0.000000e+00> : vector<8x256xf32>
    %3 = tpu.matmul %0, %2, %cst {dimension_numbers = #tpu.dot_dimension_numbers<[1], [0], [0], [1], [0, 0, 1, 1], [], []>} : vector<8x36xf32>, vector<36x256xf32>, vector<8x256xf32> -> vector<8x256xf32>
    %c0_4 = arith.constant 0 : index
    %c0_5 = arith.constant 0 : index
    %4 = vector.load %arg2[%c0_4, %c0_5] : memref<8x1xf32, #tpu.memory_space<vmem>>, vector<8x1xf32>
    %5 = vector.broadcast %4 : vector<8x1xf32> to vector<8x256xf32>
    %6 = arith.addf %3, %5 : vector<8x256xf32>
    %cst_6 = arith.constant 0.000000e+00 : f32
    %7 = vector.broadcast %cst_6 : f32 to vector<8x256xf32>
    %8 = arith.maximumf %6, %7 : vector<8x256xf32>
    %c0_7 = arith.constant 0 : index
    %c0_8 = arith.constant 0 : index
    %c0_9 = arith.constant 0 : index
    %9 = vector.load %arg4[%c0_7, %c0_8, %c0_9] : memref<1x8x256xf32, #tpu.memory_space<vmem>>, vector<1x8x256xf32>
    %10 = vector.shape_cast %9 : vector<1x8x256xf32> to vector<8x256xf32>
    %11 = vector.shape_cast %8 : vector<8x256xf32> to vector<1x8x256xf32>
    tpu.vector_store %arg4[%c0_7, %c0_8, %c0_9], %11 {strides = array<i32>} : memref<1x8x256xf32, #tpu.memory_space<vmem>>, vector<1x8x256xf32>,
    return
  }
  func.func @transform_0(%arg0: i32) -> (i32, i32) {
    %c0_i32 = arith.constant 0 : i32
    %c0_i32_0 = arith.constant 0 : i32
    %c0_i32_1 = arith.constant 0 : i32
    return %c0_i32, %c0_i32_0 : i32, i32
  }
  func.func @transform_1(%arg0: i32) -> (i32, i32) {
    %c0_i32 = arith.constant 0 : i32
    %c0_i32_0 = arith.constant 0 : i32
    %c0_i32_1 = arith.constant 0 : i32
    return %c0_i32, %c0_i32_0 : i32, i32
  }
  func.func @transform_2(%arg0: i32) -> (i32, i32, i32) {
    %c0_i32 = arith.constant 0 : i32
    %c0_i32_0 = arith.constant 0 : i32
    %c0_i32_1 = arith.constant 0 : i32
    return %arg0, %c0_i32, %c0_i32_0 : i32, i32, i32
  }
  func.func @transform_3(%arg0: i32) -> (i32, i32, i32) {
    %c0_i32 = arith.constant 0 : i32
    %c0_i32_0 = arith.constant 0 : i32
    %c0_i32_1 = arith.constant 0 : i32
    return %arg0, %c0_i32, %c0_i32_0 : i32, i32, i32
  }
}

</mosaic_0001>

<bundles_post_ra>
// kernel: tpu_custom_call.1
= control target key start
LH: loop header
LB: loop body
LE: loop exit
PB: predicated region body
PF: predicated region fallthrough
CT: control target
= control target key end

     0   :  { %8 = vsyncpa [#allocation3], 0  ;;  %s582_s0 = inlined_call_operand.vmem [shape: f32[8,36], index: 0, kind: input, shape index: {}]   ;;  %s583_s1 = inlined_call_operand.vmem [shape: f32[8,1], index: 1, kind: input, shape index: {}]   ;;  %s584_s2 = inlined_call_operand.vmem [shape: f32[2,36,256], index: 2, kind: input, shape index: {}]   ;;  %s585_s3 = inlined_call_operand.hbm [shape: f32[2,8,256], index: 3, kind: output, shape index: {}]  }
   0x1   :  { %10 = vsyncpa [#allocation3 + $0x1], 0  ;;  %s489_s12 = smov 0   ;;  %s491_s13 = smov 0  }
   0x2   :  { %s493_s14 = smov 0   ;;  %s495_s15 = smov 0  }
   0x3 LB: > { %s510_s16 = sadd.s32 4294967295, %s464_s15   ;;  %s346_s17 = sadd.s32 4294967294, %s464_s15   ;;  %s464_s15 = sphi %s495_s15, %s591_s15   ;;  %s460_s14 = sphi %s493_s14, %s590_s14   ;;  %s456_s13 = sphi %s491_s13, %s589_s13   ;;  %s452_s12 = sphi %s489_s12, %s588_s12  }
   0x4   : > { %s514_s18 = sadd.s32 1, %s464_s15   ;;  %s91_s19 = sadd.s32 1, %s460_s14 }
   0x5   : > { %s88_s20 = ssub.s32 %s464_s15, %s514_s18  ;;  %p101_p0 = scmp.ne.s32.totalorder %s460_s14, %s456_s13 }
   0x6   : > { %p89_p1 = scmp.eq.s32.totalorder %s88_s20, 0  ;;  %p102_p2 = scmp.eq.s32.totalorder %s510_s16, 1 }
   0x7   : > { %p107_p3 = scmp.ne.s32.totalorder %s456_s13, %s452_s12  ;;  %p108_p4 = scmp.eq.s32.totalorder %s346_s17, 1 }
   0x8   : > { %s525_s21 = scalar_select %p89_p1, %s460_s14, %s91_s19  }
   0x9   : > { %p527_p5 = por %p102_p2, %p101_p0  ;;  %p531_p6 = por %p108_p4, %p107_p3 }
   0xa   : > { %p349_p7 = scmp.ge.s32.totalorder %s464_s15, 1  ;;  %p140_p8 = scmp.lt.s32.totalorder %s464_s15, 3 }
   0xc   : > { %p141_p9 = pnand %p349_p7, %p140_p8 }
   0xd   : > { %p164_p10 = scmp.lt.s32.totalorder (!%p141_p9), %s510_s16, 1  ;;  %s161_s6 = sand.u32 (!%p141_p9), 1, %s456_s13  }
   0xe   : > { %144 = sbr.rel (%p141_p9) target bundleno = 247 (0xf7), region = 32  ;;  %s350_s7 = sshll.u32 (!%p141_p9), %s161_s6, 4 }
   0xf   : > { %s360_s8 = sshll.u32 (!%p141_p9), %s510_s16, 8  ;;  %s163_s9 = scalar_lea.vmem (!%p141_p9), [#allocation2], %s350_s7 }
  0x10   : > { %s287_s10 = sshll.u32 (!%p141_p9), %s163_s9, 4  ;;  %s285_s19 = scalar_lea.hbm (!%p141_p9), %s585_s3, %s360_s8  ;;  %s288_s10 = int_to_ptr.vmem [resolvable:$true] %s287_s10 }
  0x11   : > { %s273_s20 = scalar_lea.sflag (!%p141_p9), [#allocation3], %s161_s6  ;;  %s404_s24 = scalar_lea.vmem (!%p141_p9), %s288_s10, 256 }
  0x12   : > { %p405_p11 = scmp.ne.s32.totalorder (!%p141_p9), %s288_s10, %s404_s24  ;;  %s468_s25 = smov (!%p141_p9), [#allocation2]  }
  0x13   : > { %v466_v0 = vmov 0.0   ;;  %v467_v1 = vmov 0   ;;  %v180_v2 = vld [vmem:[%s583_s1] sm:$0xff]  ;;  %s165_s26 = scalar_select %p164_p10, %s510_s16, 1  ;;  %vm190_vm0 = vcmask 1043456   ;;  %vm186_vm1 = vcmask 293888  }
  0x14   : > { %261 = vmatprep.mubr.f32.mxu0 %v466_v0  ;;  %403 = vset.pattern.permute.xlu0 %v467_v1  ;;  %v169_v13 = vld [vmem:[%s582_s0] sm:$0xff]  ;;  %p406_p12 = pnand %p405_p11, %p527_p5  ;;  %s408_s16 = sshll.u32 %s468_s25, 4  ;;  %s409_s16 = int_to_ptr.vmem [resolvable:$false] %s408_s16 }
  0x15   : > { %183 = vperm.xlu0 %403, %v180_v2   ;;  %s361_s27 = smul.u32 80, %s165_s26  ;;  %s410_s26 = scalar_lea.vmem %s409_s16, 512 }
  0x16   : > { %p407_p13 = pneg %p406_p12  ;;  %p411_p0 = scmp.lt.s32.totalorder %s288_s10, %s409_s16 }
  0x17   : > { %s168_s30 = scalar_lea.vmem %s584_s2, %s361_s27  ;;  %p412_p1 = scmp.lt.s32.totalorder %s410_s26, %s404_s24 }
  0x18   : > { %v179_v3 = vld [vmem:[%s168_s30 + $0x48] sm:$0xf]  ;;  %v178_v4 = vld [vmem:[%s168_s30 + $0x40] sm:$0xf]  ;;  %v177_v5 = vld [vmem:[%s168_s30 + $0x38] sm:$0xff] }
  0x19   : > { %352 = vmatprep.subr.msk.mxu0 %vm190_vm0, %v179_v3  ;;  %v176_v6 = vld [vmem:[%s168_s30 + $0x30] sm:$0xff]  ;;  %v175_v7 = vld [vmem:[%s168_s30 + $0x28] sm:$0xff]  ;;  %v174_v8 = vld [vmem:[%s168_s30 + $0x20] sm:$0xff]  ;;  %p413_p2 = por %p412_p1, %p411_p0 }
  0x1a   : > { %353 = vmatpush1.msk.msra.mxu0 %vm190_vm0, %v178_v4  ;;  %v173_v9 = vld [vmem:[%s168_s30 + $0x18] sm:$0xff]  ;;  %v172_v10 = vld [vmem:[%s168_s30 + $0x10] sm:$0xff]  ;;  %v171_v11 = vld [vmem:[%s168_s30 + $0x8] sm:$0xff] }
  0x1b   : > { %221 = vmatprep.subr.mxu0 %v177_v5  ;;  %v170_v12 = vld [vmem:[%s168_s30] sm:$0xff]  ;;  %p414_p3 = pnand %p413_p2, %p407_p13 }
  0x1c   : > { %222 = vmatpush1.msra.mxu0 %v176_v6 }
  0x1d   : > { %223 = vmatprep.subr.mxu0 %v175_v7 }
  0x1e   : > { %224 = vmatpush1.msra.mxu0 %v174_v8 }
  0x1f   : > { %225 = vmatprep.subr.mxu0 %v173_v9 }
  0x20   : > { %226 = vmatpush1.msra.mxu0 %v172_v10 }
  0x21   : > { %227 = vmatprep.subr.mxu0 %v171_v11 }
  0x22   : > { %228 = vmatpush1.msra.mxu0 %v170_v12 }
  0x23   : > { %354 = vmatmul.mubr.msk.f32.vlgmr.msra.gmra.mxu0 %vm186_vm1, %v169_v13 }
  0x90   : > { %v184_v14 = vpop.permute.xlu0 %183 }
  0xe3   : > { %v263_v15 = vpop.f32.mrf.mxu0 }
  0xe4   : > { %v264_v16 = vadd.f32 %v263_v15, %v184_v14 }
  0xe5   : > { %v265_v17 = vpop.f32.mrf.mxu0 }
  0xe6   : > { %v268_v18 = vmax.f32 %v264_v16, 0.0  ;;  %v266_v19 = vadd.f32 %v265_v17, %v184_v14 }
  0xe8   : > { %270 = vst [vmem:[%s163_s9] sm:$0xff] %v268_v18  ;;  %v269_v20 = vmax.f32 %v266_v19, 0.0 }
  0xea   : > { %271 = vst [vmem:[%s163_s9 + $0x8] sm:$0xff] %v269_v20 }
  0xeb   : > { %417 = shalt.err (!%p414_p3)
}
  0xec   : > { %s418_s27 = scalar_lea.hbm %s285_s19, 256  ;;  %s422_s30 = scalar_lea.hbm %s585_s3, 512 }
  0xed   : > { %p419_p4 = scmp.ne.s32.totalorder %s285_s19, %s418_s27  ;;  %p423_p9 = scmp.lt.s32.totalorder %s285_s19, %s585_s3 }
  0xee   : > { %p424_p10 = scmp.lt.s32.totalorder %s422_s30, %s418_s27 }
  0xef   : > { %p420_p7 = pnand %p419_p4, %p527_p5 }
  0xf0   : > { %p425_p11 = por %p424_p10, %p423_p9 }
  0xf1   : > { %p421_p8 = pneg %p420_p7 }
  0xf3   : > { %p426_p12 = pnand %p425_p11, %p421_p8 }
  0xf5   : > { %429 = shalt.err (!%p426_p12)
}
  0xf6   : > { %362 = dma.vmem_to_hbm [thread:$0]  (%p527_p5), %s288_s10, 256, %s285_s19, %s273_s20  }
  0xf7 PF: > { %p368_p13 = scmp.ge.s32.totalorder %s464_s15, 2  ;;  %s299_s6 = sand.u32 1, %s452_s12  }
  0xf8   : > { %s300_s7 = scalar_lea.sflag [#allocation3], %s299_s6 }
  0xf9   : > { %p365_p0 = pnand %p368_p13, %p531_p6 }
  0xfb   : > { %p366_p1 = pneg %p365_p0 }
  0xfd   : > { %447 = dma.done.wait (%p366_p1), %s300_s7, 256  }
  0xfe   : > { %449 = vsyncadd (%p366_p1), %s300_s7, 4294967040  ;;  %p13_p2 = scmp.ge.s32.totalorder %s514_s18, 4   ;;  %s588_s12 = smov %s456_s13 }
  0xff   : > { %s589_s13 = smov %s460_s14  ;;  %s590_s14 = smov %s525_s21 }
 0x100   : > { %s591_s15 = smov %s514_s18  ;;  %15 = sbr.rel (!%p13_p2) target bundleno = 3 (0x3), region = 67 }
 0x105   :  { %305 = vsyncpa [#allocation3], 1 }
 0x106   :  { %307 = vsyncpa [#allocation3 + $0x1], 1 }

</bundles_post_ra>
